<compile_context>
chip_gen: v5e
topology: v5e:2x2
jax: 0.10.0
libtpu: 0.0.40
codegen_flags: <defaults>
</compile_context>

<pallas_src>
import jax
import jax.numpy as jnp
from jax.experimental import pallas as pl
from jax.experimental.pallas import tpu as pltpu

ACTION_VEC_LEN = 30  # target_mask default is zeros(30) in the reference module

LANE = 128     # TPU vreg lane width
SUBLANE = 8    # TPU vreg sublane count (f32)
TILE_R = 8     # rows per grid step (one full sublane group)


def softermax_kernel(mask_ref, o_ref):
    """Row-wise SofterMax of an all-ones x against each mask row.

    mask_ref / o_ref: (TILE_R, N_pad) f32 tiles, fully VMEM-resident.
    Since x == 1 everywhere, x * mask == mask, so only the mask is needed.
    """
    m = mask_ref[...].astype(jnp.float32)     # (R, N)
    sel = m > 0.0                              # masked (active) region
    xm = m                                     # x * mask with x == ones

    # number of masked elements per row (integer-valued float; exact compare
    # against 1.0 below is safe because it is a count of booleans)
    cnt = jnp.sum(sel.astype(jnp.float32), axis=-1, keepdims=True)  # (R, 1)

    # softmax restricted to the masked region (denominator over masked only)
    neg_big = jnp.float32(-1e30)
    z = jnp.where(sel, xm, neg_big)
    zmax = jnp.max(z, axis=-1, keepdims=True)
    e = jnp.where(sel, jnp.exp(z - zmax), 0.0)
    denom = jnp.sum(e, axis=-1, keepdims=True)
    inv_denom = pl.reciprocal(jnp.maximum(denom, jnp.float32(1e-30)), approx=True)
    softmax_vals = e * inv_denom

    # sigmoid branch (used when exactly one masked element)
    sigmoid_vals = pl.reciprocal(1.0 + jnp.exp(-xm), approx=True)

    branch = jnp.where(cnt == 1.0, sigmoid_vals, softmax_vals)
    # unmasked positions keep x * mask (also covers cnt == 0 and padded lanes)
    o_ref[...] = jnp.where(sel, branch, xm)


def softermax_rows(masks):
    """SofterMax of an all-ones vector against each row of `masks`.

    masks: (R, N) float -> (R, N) f32. Rows/lanes are zero-padded up to
    (multiple of 8, multiple of 128) so every load/store is a full vreg;
    padded entries are zero-masked and produce zeros, then sliced away.
    """
    masks = masks.astype(jnp.float32)
    R, N = masks.shape
    R_pad = pl.cdiv(R, TILE_R) * TILE_R
    N_pad = pl.cdiv(N, LANE) * LANE
    mp = jnp.zeros((R_pad, N_pad), jnp.float32).at[:R, :N].set(masks)

    grid = (R_pad // TILE_R,)
    out = pl.pallas_call(
        softermax_kernel,
        out_shape=jax.ShapeDtypeStruct((R_pad, N_pad), jnp.float32),
        grid=grid,
        in_specs=[
            pl.BlockSpec((TILE_R, N_pad), lambda i: (i, 0),
                         memory_space=pltpu.MemorySpace.VMEM),
        ],
        out_specs=pl.BlockSpec((TILE_R, N_pad), lambda i: (i, 0),
                               memory_space=pltpu.MemorySpace.VMEM),
        compiler_params=pltpu.CompilerParams(
            dimension_semantics=("parallel",)),  # shards rows across TCs on v7x
    )(mp)
    return out[:R, :N]


def random_agent_forward(game_state, action_mask, target_mask=None):
    """RandomAgent.forward. `game_state` is unused (matches the reference)."""
    del game_state
    if target_mask is None:
        target_mask = jnp.zeros((ACTION_VEC_LEN,), jnp.float32)

    # Only the two data-dependent SofterMax problems go through the kernel.
    masks = jnp.stack(
        [action_mask.astype(jnp.float32), target_mask.astype(jnp.float32)],
        axis=0,
    )  # (2, N)
    out = softermax_rows(masks)
    actions = out[0]
    targets = out[1]

    # SofterMax(ones, zeros): x*mask == 0 everywhere and no active positions,
    # so the result is identically zero -> constant-fold instead of DMA'ing
    # constant zero rows through the kernel.
    cards_to_keep = jnp.zeros((ACTION_VEC_LEN,), jnp.float32)
    exchange_dist = jnp.zeros((ACTION_VEC_LEN,), jnp.float32)

    return actions, cards_to_keep, targets, exchange_dist


if __name__ == "__main__":
    key = jax.random.PRNGKey(0)
    k_gs, k_am, k_tm = jax.random.split(key, 3)

    # small deterministic inputs
    game_state = jax.random.normal(k_gs, (2, 16), dtype=jnp.float32)
    # binary action mask with several active entries -> softmax branch
    action_mask = (jax.random.uniform(k_am, (ACTION_VEC_LEN,)) > 0.5).astype(
        jnp.float32
    )
    # one-hot target mask -> sigmoid branch
    tgt_idx = jax.random.randint(k_tm, (), 0, ACTION_VEC_LEN)
    target_mask = jnp.zeros((ACTION_VEC_LEN,), jnp.float32).at[tgt_idx].set(1.0)

    actions, cards_to_keep, targets, exchange_dist = jax.block_until_ready(
        random_agent_forward(game_state, action_mask, target_mask)
    )

    # light sanity checks of the reference semantics (tolerances loosened
    # slightly because the kernel uses approx reciprocal on the EUP)
    n_active = float(jnp.sum(action_mask > 0))
    if n_active > 1:
        assert abs(float(jnp.sum(actions)) - 1.0) < 5e-3  # softmax over masked
    assert float(jnp.max(jnp.abs(cards_to_keep))) == 0.0  # zero mask -> zeros
    assert float(jnp.max(jnp.abs(exchange_dist))) == 0.0  # zero mask -> zeros
    # single masked element -> sigmoid(1.0) at that position, 0 elsewhere
    expected_sig = 1.0 / (1.0 + float(jnp.exp(-1.0)))
    assert abs(float(targets[tgt_idx]) - expected_sig) < 5e-3
    off_target = jnp.sum(jnp.abs(targets)) - jnp.abs(targets[tgt_idx])
    assert float(off_target) == 0.0

    print("KERNEL_OK")
</pallas_src>

<mosaic_0001>
module attributes {stable_mosaic.version = 11 : i64} {
  func.func @softermax_kernel(%arg0: i32, %arg1: memref<8x128xf32, #tpu.memory_space<vmem>>, %arg2: memref<8x128xf32, #tpu.memory_space<vmem>>) attributes {dimension_semantics = [#tpu.dimension_semantics<parallel>], iteration_bounds = array<i64: 1>, scalar_prefetch = 0 : i64, scratch_operands = 0 : i64, tpu.core_type = #tpu.core_type<tc>, window_params = [{transform_indices = @transform_0, window_bounds = array<i64: 8, 128>}, {transform_indices = @transform_1, window_bounds = array<i64: 8, 128>}]} {
    %c0 = arith.constant 0 : index
    %c0_0 = arith.constant 0 : index
    %0 = vector.load %arg1[%c0, %c0_0] : memref<8x128xf32, #tpu.memory_space<vmem>>, vector<8x128xf32>
    %cst = arith.constant 0.000000e+00 : f32
    %1 = vector.broadcast %cst : f32 to vector<8x128xf32>
    %2 = arith.cmpf ogt, %0, %1 : vector<8x128xf32>
    %3 = arith.extui %2 : vector<8x128xi1> to vector<8x128xi32>
    %4 = arith.sitofp %3 : vector<8x128xi32> to vector<8x128xf32>
    %cst_1 = arith.constant dense<0.000000e+00> : vector<8xf32>
    %5 = vector.multi_reduction <add>, %4, %cst_1 [1] : vector<8x128xf32> to vector<8xf32>
    %6 = vector.shape_cast %5 : vector<8xf32> to vector<8x1xf32>
    %cst_2 = arith.constant -1.000000e+30 : f32
    %7 = vector.broadcast %cst_2 : f32 to vector<8x128xf32>
    %8 = arith.select %2, %0, %7 : vector<8x128xi1>, vector<8x128xf32>
    %cst_3 = arith.constant dense<0xFF800000> : vector<8xf32>
    %9 = vector.multi_reduction <maximumf>, %8, %cst_3 [1] : vector<8x128xf32> to vector<8xf32>
    %10 = vector.shape_cast %9 : vector<8xf32> to vector<8x1xf32>
    %11 = vector.broadcast %10 : vector<8x1xf32> to vector<8x128xf32>
    %12 = arith.subf %8, %11 : vector<8x128xf32>
    %13 = math.exp %12 : vector<8x128xf32>
    %cst_4 = arith.constant 0.000000e+00 : f32
    %14 = vector.broadcast %cst_4 : f32 to vector<8x128xf32>
    %15 = arith.select %2, %13, %14 : vector<8x128xi1>, vector<8x128xf32>
    %cst_5 = arith.constant dense<0.000000e+00> : vector<8xf32>
    %16 = vector.multi_reduction <add>, %15, %cst_5 [1] : vector<8x128xf32> to vector<8xf32>
    %17 = vector.shape_cast %16 : vector<8xf32> to vector<8x1xf32>
    %cst_6 = arith.constant 1.000000e-30 : f32
    %18 = vector.broadcast %cst_6 : f32 to vector<8x1xf32>
    %19 = arith.maximumf %17, %18 : vector<8x1xf32>
    %20 = tpu.reciprocal %19 {approx = true} : vector<8x1xf32> -> vector<8x1xf32>
    %21 = vector.broadcast %20 : vector<8x1xf32> to vector<8x128xf32>
    %22 = arith.mulf %15, %21 : vector<8x128xf32>
    %cst_7 = arith.constant 0.000000e+00 : f32
    %23 = vector.broadcast %cst_7 : f32 to vector<8x128xf32>
    %24 = arith.subf %23, %0 : vector<8x128xf32>
    %25 = math.exp %24 : vector<8x128xf32>
    %cst_8 = arith.constant 1.000000e+00 : f32
    %26 = vector.broadcast %cst_8 : f32 to vector<8x128xf32>
    %27 = arith.addf %26, %25 : vector<8x128xf32>
    %28 = tpu.reciprocal %27 {approx = true} : vector<8x128xf32> -> vector<8x128xf32>
    %cst_9 = arith.constant 1.000000e+00 : f32
    %29 = vector.broadcast %cst_9 : f32 to vector<8x1xf32>
    %30 = arith.cmpf oeq, %6, %29 : vector<8x1xf32>
    %31 = vector.shape_cast %30 : vector<8x1xi1> to vector<8x1xi1>
    %32 = vector.broadcast %31 : vector<8x1xi1> to vector<8x128xi1>
    %33 = arith.select %32, %28, %22 : vector<8x128xi1>, vector<8x128xf32>
    %34 = arith.select %2, %33, %0 : vector<8x128xi1>, vector<8x128xf32>
    %c0_10 = arith.constant 0 : index
    %c0_11 = arith.constant 0 : index
    %35 = vector.load %arg2[%c0_10, %c0_11] : memref<8x128xf32, #tpu.memory_space<vmem>>, vector<8x128xf32>
    tpu.vector_store %arg2[%c0_10, %c0_11], %34 {strides = array<i32>} : memref<8x128xf32, #tpu.memory_space<vmem>>, vector<8x128xf32>,
    return
  }
  func.func @transform_0(%arg0: i32) -> (i32, i32) {
    %c0_i32 = arith.constant 0 : i32
    %c0_i32_0 = arith.constant 0 : i32
    return %arg0, %c0_i32 : i32, i32
  }
  func.func @transform_1(%arg0: i32) -> (i32, i32) {
    %c0_i32 = arith.constant 0 : i32
    %c0_i32_0 = arith.constant 0 : i32
    return %arg0, %c0_i32 : i32, i32
  }
}

</mosaic_0001>

<bundles_post_ra>
// kernel: tpu_custom_call.1
= control target key start
LH: loop header
LB: loop body
LE: loop exit
PB: predicated region body
PF: predicated region fallthrough
CT: control target
= control target key end

     0   :  { %6 = vsyncpa [#allocation3], 0  ;;  %s156_s0 = inlined_call_operand.hbm [shape: f32[8,128], index: 0, kind: input, shape index: {}]   ;;  %s157_s1 = inlined_call_operand.hbm [shape: f32[8,128], index: 1, kind: output, shape index: {}]  }
   0x1   :  { %7 = vsyncpa [#allocation4], 0  ;;  %s13_s8 = sshll.u32 %s156_s0, 4  ;;  %s133_s9 = smov [#allocation2]   ;;  %s14_s8 = int_to_ptr.hbm [resolvable:$true] %s13_s8 }
   0x2   :  { %s15_s10 = sshll.u32 %s133_s9, 4  ;;  %s16_s10 = int_to_ptr.vmem [resolvable:$true] %s15_s10 }
   0x3   :  { %18 = dma.hbm_to_vmem [thread:$0]  %s14_s8, 128, %s16_s10, [#allocation3]  }
   0x4   :  { %129 = dma.done.wait [#allocation3], 128  }
   0x5   :  { %130 = vsyncadd [#allocation3], 4294967168  ;;  %v23_v0 = vld [vmem:[#allocation2] sm:$0xff]  ;;  %v134_v2 = vmov 0.0   ;;  %s135_s0 = smov [#allocation5]   ;;  %s59_s14 = sshll.u32 %s157_s1, 4  ;;  %s60_s14 = int_to_ptr.hbm [resolvable:$true] %s59_s14 }
   0x6   :  { %vm24_vm0 = vcmp.gt.f32.partialorder %v23_v0, 0.0  ;;  %v41_v9 = vsub.f32 0.0, %v23_v0  ;;  %s57_s11 = sshll.u32 %s135_s0, 4  ;;  %s58_s11 = int_to_ptr.vmem [resolvable:$true] %s57_s11 }
   0x7   :  { %v29_v1 = vsel %vm24_vm0, %v23_v0, -1e+30  ;;  %v69_v3 = vsel %vm24_vm0, 1.0, %v134_v2 }
   0x8   :  { %30 = vmax.xlane.f32.xlu0 %v29_v1  ;;  %27 = vadd.xlane.f32.xlu1 %v69_v3  ;;  %v42_v10 = vmul.f32 1.442695, %v41_v9 }
  0x7b   :  { %v31_v4 = vpop.xlane.xlu0 %30  ;;  %v28_v15 = vpop.xlane.xlu1 %27 }
  0x7c   :  { %v32_v5 = vsub.f32 %v29_v1, %v31_v4  ;;  %vm46_vm1 = vcmp.eq.f32.partialorder %v28_v15, 1.0 }
  0x7e   :  { %v33_v6 = vmul.f32 1.442695, %v32_v5 }
  0x80   :  { %73 = vpow2.f32 %v33_v6 }
  0x81   :  { %75 = vpow2.f32 %v42_v10 }
  0x86   :  { %v74_v7 = vpop.eup %73 }
  0x87   :  { %v35_v8 = vsel %vm24_vm0, %v74_v7, 0.0  ;;  %v76_v11 = vpop.eup %75 }
  0x88   :  { %36 = vadd.xlane.f32.xlu0 %v35_v8  ;;  %v44_v12 = vadd.f32 1.0, %v76_v11 }
  0x8a   :  { %77 = vrcp.f32 %v44_v12 }
  0x90   :  { %v78_v16 = vpop.eup %77 }
  0xfb   :  { %v37_v13 = vpop.xlane.xlu0 %36 }
  0xfc   :  { %v38_v14 = vmax.f32 %v37_v13, 1e-30 }
  0xfe   :  { %79 = vrcp.f32 %v38_v14 }
 0x104   :  { %v80_v17 = vpop.eup %79 }
 0x105   :  { %v40_v18 = vmul.f32 %v80_v17, %v35_v8 }
 0x107   :  { %v49_v19 = vsel %vm46_vm1, %v78_v16, %v40_v18 }
 0x108   :  { %v50_v20 = vsel %vm24_vm0, %v49_v19, %v23_v0 }
 0x109   :  { %51 = vst [vmem:[#allocation5] sm:$0xff] %v50_v20 }
 0x10a   :  { %62 = dma.vmem_to_hbm [thread:$0]  %s58_s11, 128, %s60_s14, [#allocation4]  }
 0x10b   :  { %131 = dma.done.wait [#allocation4], 128  }
 0x10c   :  { %132 = vsyncadd [#allocation4], 4294967168 }
 0x10d   :  { %67 = vsyncpa [#allocation3], 1 }
 0x10e   :  { %68 = vsyncpa [#allocation4], 1 }

</bundles_post_ra>
